<compile_context>
chip_gen: v7x
topology: tpu7x:2x2x1
jax: 0.10.0
libtpu: 0.0.40
codegen_flags: <defaults>
</compile_context>

<pallas_src>
import functools

import jax
import jax.numpy as jnp
from jax import lax
from jax.experimental import pallas as pl
from jax.experimental.pallas import tpu as pltpu


def _pla_kernel(x_ref, w_ref, b_ref, gamma_ref, o_ref, *, eps, cq_pad, bt):
    gamma = gamma_ref[0]                     # scalar from SMEM
    n = x_ref.shape[-1]                      # true N (no padding anywhere)

    def body(bi, carry):
        x = x_ref[bi]                        # (C, N) f32

        # All three 1x1x1 Conv3d as ONE channel matmul (+ bias broadcast over positions).
        proj = jnp.dot(w_ref[...], x, preferred_element_type=jnp.float32) + b_ref[...]
        q = proj[:cq_pad]                    # (Cq_pad, N); rows beyond the real Cq are zero
        k = proj[cq_pad:2 * cq_pad]          # (Cq_pad, N)
        v = proj[2 * cq_pad:]                # (C, N)

        # l2_norm over the channel dim (torch.norm over dim=-2); rsqrt -> EUP slot.
        qn = q * lax.rsqrt(jnp.sum(q * q, axis=0, keepdims=True))
        kn = k * lax.rsqrt(jnp.sum(k * k, axis=0, keepdims=True))

        # tailor_sum = 1 / (N + Q^T (sum_n K + eps)); padded q/k rows are exactly zero, so they
        # contribute nothing even after the +eps shift.
        ksum = jnp.sum(kn, axis=1, keepdims=True) + eps                       # (Cq_pad, 1)
        denom = jnp.float32(n) + jnp.sum(qn * ksum, axis=0, keepdims=True)    # (1, N)
        tailor = pl.reciprocal(denom, approx=True)                            # EUP, ~free

        value_sum = jnp.sum(v, axis=1, keepdims=True)                         # (C, 1)

        # matrix[m, c] = sum_n kn[m, n] * v[c, n]   ('bmn,bcn->bmc')  -> MXU (trans_b).
        matrix = lax.dot_general(kn, v, (((1,), (1,)), ((), ())),
                                 preferred_element_type=jnp.float32)          # (Cq_pad, C)

        # qm[c, n] = sum_m matrix[m, c] * qn[m, n]  ('bnm,bmc->bcn')  -> MXU (trans_a).
        qm = lax.dot_general(matrix, qn, (((0,), (0,)), ((), ())),
                             preferred_element_type=jnp.float32)              # (C, N)

        o_ref[bi] = x + gamma * ((value_sum + qm) * tailor)
        return carry

    if bt == 1:
        body(0, None)
    else:
        lax.fori_loop(0, bt, body, None, unroll=2)


def position_linear_attention(x, wq, bq, wk, bk, wv, bv, gamma, eps=1e-6):
    """x: (B, C, W, H, Ch) float32. Returns same shape.

    Matches the PyTorch reference, whose final .view(B, C, height, width, channel) + residual
    add itself requires W == H; under that condition the flat (B, C, N) ordering used here is
    exactly the reference element ordering.
    """
    B, C, W, H, Ch = x.shape
    N = W * H * Ch
    Cq = wq.shape[0]
    Cq_pad = max(8, ((Cq + 7) // 8) * 8)      # sublane-aligned q/k/v slice boundaries

    x_flat = x.reshape(B, C, N).astype(jnp.float32)

    # Pack Wq|Wk|Wv into one projection weight (one MXU stream of x per batch element).
    # Padded Wq/Wk rows and their biases are zero, so they are inert everywhere downstream.
    def _pad_rows(w, rows):
        return jnp.pad(w.astype(jnp.float32), ((0, rows - w.shape[0]), (0, 0)))

    w_all = jnp.concatenate([_pad_rows(wq, Cq_pad), _pad_rows(wk, Cq_pad),
                             wv.astype(jnp.float32)], axis=0)                 # (2Cq_pad+C, C)
    b_all = jnp.concatenate([
        jnp.pad(bq.astype(jnp.float32), (0, Cq_pad - Cq)),
        jnp.pad(bk.astype(jnp.float32), (0, Cq_pad - Cq)),
        bv.astype(jnp.float32)], axis=0).reshape(-1, 1)                       # (2Cq_pad+C, 1)
    gamma_s = gamma.reshape(1).astype(jnp.float32)

    # Generation-aware blocking: v5e/v6e are single-TC with 128 MiB VMEM (big slabs, no forced
    # split); v7x-class parts (<= 64 MiB VMEM) have 2 TCs, so keep >= 2 grid steps when B >= 2.
    try:
        vmem_cap = int(pltpu.get_tpu_info().vmem_capacity_bytes)
    except Exception:
        vmem_cap = 128 * 1024 * 1024
    small_vmem = vmem_cap <= 64 * 1024 * 1024
    num_tc = 2 if small_vmem else 1

    bytes_per_batch = 2 * C * N * 4                      # one in + one out slab per batch elem
    target_bytes = (4 if small_vmem else 12) * 1024 * 1024
    Bt = max(1, min(B, target_bytes // max(bytes_per_batch, 1)))
    if num_tc >= 2 and B >= 2:
        Bt = min(Bt, max(1, B // 2))
    while B % Bt:
        Bt -= 1
    grid_b = B // Bt

    # Scoped-VMEM request: double-buffered in/out slabs + (C, N) intermediates of the live
    # batch element + packed weights, with headroom; capped below physical VMEM (48 MiB on
    # v7x-class parts, <= 100 MiB on 128 MiB single-TC parts).
    w_bytes = (w_all.size + b_all.size) * 4
    est = (4 * Bt + 8) * C * N * 4 + 4 * w_bytes + 2 * 1024 * 1024
    cap = (48 * 1024 * 1024 if small_vmem
           else min(vmem_cap - 16 * 1024 * 1024, 100 * 1024 * 1024))
    vmem_bytes = int(min(cap, max(32 * 1024 * 1024, est)))
    # TODO(synk): add an N-tiled two-pass fallback (pass 1 accumulates ksum/value_sum/matrix,
    # pass 2 emits output columns) for shapes whose per-batch (C, N) working set exceeds the
    # VMEM cap (matters on v7x's 64 MiB).
    # TODO(synk): when B == 1 on 2-TC parts, add a second parallel grid axis over N so both
    # TensorCores get work.
    # TODO(synk): optional bf16 HBM/MXU path (f32 reductions) for bandwidth-bound shapes.

    kernel = functools.partial(_pla_kernel, eps=eps, cq_pad=Cq_pad, bt=Bt)

    out_flat = pl.pallas_call(
        kernel,
        out_shape=jax.ShapeDtypeStruct((B, C, N), jnp.float32),
        grid_spec=pltpu.PrefetchScalarGridSpec(
            num_scalar_prefetch=0,
            grid=(grid_b,),
            in_specs=[
                pl.BlockSpec((Bt, C, N), lambda b: (b, 0, 0)),            # x slab
                pl.BlockSpec((2 * Cq_pad + C, C), lambda b: (0, 0)),      # Wq|Wk|Wv packed
                pl.BlockSpec((2 * Cq_pad + C, 1), lambda b: (0, 0)),      # bq|bk|bv packed
                pl.BlockSpec(memory_space=pltpu.MemorySpace.SMEM),        # gamma (scalar)
            ],
            out_specs=pl.BlockSpec((Bt, C, N), lambda b: (b, 0, 0)),
        ),
        compiler_params=pltpu.CompilerParams(
            dimension_semantics=("parallel",),
            vmem_limit_bytes=vmem_bytes),
    )(x_flat, w_all, b_all, gamma_s)

    return out_flat.reshape(B, C, W, H, Ch)


def _reference(x, wq, bq, wk, bk, wv, bv, gamma, eps=1e-6):
    """Pure-JAX transcription of the PyTorch forward for verification."""
    B, C, W, H, Ch = x.shape
    N = W * H * Ch
    xf = x.reshape(B, C, N)
    Q = jnp.einsum('oc,bcn->bon', wq, xf) + bq[None, :, None]
    K = jnp.einsum('oc,bcn->bon', wk, xf) + bk[None, :, None]
    V = jnp.einsum('oc,bcn->bon', wv, xf) + bv[None, :, None]
    Qn = Q / jnp.linalg.norm(Q, axis=-2, keepdims=True)
    Kn = K / jnp.linalg.norm(K, axis=-2, keepdims=True)
    Qp = jnp.transpose(Qn, (0, 2, 1))
    tailor = 1.0 / (N + jnp.einsum('bnc,bc->bn', Qp, jnp.sum(Kn, axis=-1) + eps))
    value_sum = jnp.einsum('bcn->bc', V)[:, :, None]
    matrix = jnp.einsum('bmn,bcn->bmc', Kn, V)
    matrix_sum = value_sum + jnp.einsum('bnm,bmc->bcn', Qp, matrix)
    wval = jnp.einsum('bcn,bn->bcn', matrix_sum, tailor)
    return (xf + gamma[0] * wval).reshape(B, C, W, H, Ch)


def _run_case(key, B, C, W, H, Ch):
    Cq = C // 8
    k1, k2, k3, k4, k5, k6, k7 = jax.random.split(key, 7)
    x = jax.random.normal(k1, (B, C, W, H, Ch), jnp.float32)
    wq = jax.random.normal(k2, (Cq, C), jnp.float32) * 0.1
    bq = jax.random.normal(k3, (Cq,), jnp.float32) * 0.1
    wk = jax.random.normal(k4, (Cq, C), jnp.float32) * 0.1
    bk = jax.random.normal(k5, (Cq,), jnp.float32) * 0.1
    wv = jax.random.normal(k6, (C, C), jnp.float32) * 0.1
    bv = jax.random.normal(k7, (C,), jnp.float32) * 0.1
    # gamma is zero-initialized in the module; use a nonzero value so the attention branch
    # actually contributes to the checked output.
    gamma = jnp.array([0.5], jnp.float32)

    out = position_linear_attention(x, wq, bq, wk, bk, wv, bv, gamma)
    out = jax.block_until_ready(out)
    ref = _reference(x, wq, bq, wk, bk, wv, bv, gamma)
    assert out.shape == x.shape
    err = float(jnp.max(jnp.abs(out - ref)))
    assert jnp.allclose(out, ref, atol=1e-3, rtol=1e-3), err


if __name__ == "__main__":
    key = jax.random.PRNGKey(0)
    k_a, k_b = jax.random.split(key)
    # Case 1: N = 4*4*8 = 128 (lane-aligned), B=2.
    _run_case(k_a, B=2, C=16, W=4, H=4, Ch=8)
    # Case 2: N = 3*3*5 = 45 -> full-extent (unpadded) last dim, masked tail stores in-kernel.
    _run_case(k_b, B=3, C=16, W=3, H=3, Ch=5)
    print("KERNEL_OK")
</pallas_src>

<mosaic_0001>
module attributes {stable_mosaic.version = 11 : i64} {
  func.func @_pla_kernel(%arg0: i32, %arg1: memref<2x16x128xf32, #tpu.memory_space<vmem>>, %arg2: memref<32x16xf32, #tpu.memory_space<vmem>>, %arg3: memref<32x1xf32, #tpu.memory_space<vmem>>, %arg4: memref<1xf32, #tpu.memory_space<smem>>, %arg5: memref<2x16x128xf32, #tpu.memory_space<vmem>>) attributes {dimension_semantics = [#tpu.dimension_semantics<parallel>], iteration_bounds = array<i64: 1>, scalar_prefetch = 0 : i64, scratch_operands = 0 : i64, tpu.core_type = #tpu.core_type<tc>, window_params = [{transform_indices = @transform_0, window_bounds = array<i64: 2, 16, 128>}, {pipeline_mode = #tpu.pipeline_mode<synchronous>, transform_indices = @transform_1, window_bounds = array<i64: 32, 16>}, {pipeline_mode = #tpu.pipeline_mode<synchronous>, transform_indices = @transform_2, window_bounds = array<i64: 32, 1>}, {transform_indices = @transform_3, window_bounds = array<i64: 1>}, {transform_indices = @transform_4, window_bounds = array<i64: 2, 16, 128>}]} {
    %c0 = arith.constant 0 : index
    %0 = memref.load %arg4[%c0] : memref<1xf32, #tpu.memory_space<smem>>
    %c0_i32 = arith.constant 0 : i32
    %1 = arith.index_cast %c0_i32 : i32 to index
    %c0_0 = arith.constant 0 : index
    %c0_1 = arith.constant 0 : index
    %2 = vector.load %arg1[%1, %c0_0, %c0_1] : memref<2x16x128xf32, #tpu.memory_space<vmem>>, vector<1x16x128xf32>
    %3 = vector.shape_cast %2 : vector<1x16x128xf32> to vector<16x128xf32>
    %c0_2 = arith.constant 0 : index
    %c0_3 = arith.constant 0 : index
    %4 = vector.load %arg2[%c0_2, %c0_3] : memref<32x16xf32, #tpu.memory_space<vmem>>, vector<32x16xf32>
    %cst = arith.constant dense<0.000000e+00> : vector<32x128xf32>
    %5 = tpu.matmul %4, %3, %cst {dimension_numbers = #tpu.dot_dimension_numbers<[1], [0], [0], [1], [0, 0, 1, 1], [], []>} : vector<32x16xf32>, vector<16x128xf32>, vector<32x128xf32> -> vector<32x128xf32>
    %c0_4 = arith.constant 0 : index
    %c0_5 = arith.constant 0 : index
    %6 = vector.load %arg3[%c0_4, %c0_5] : memref<32x1xf32, #tpu.memory_space<vmem>>, vector<32x1xf32>
    %7 = vector.broadcast %6 : vector<32x1xf32> to vector<32x128xf32>
    %8 = arith.addf %5, %7 : vector<32x128xf32>
    %9 = vector.extract_strided_slice %8 {offsets = [0, 0], sizes = [8, 128], strides = [1, 1]} : vector<32x128xf32> to vector<8x128xf32>
    %10 = vector.extract_strided_slice %8 {offsets = [8, 0], sizes = [8, 128], strides = [1, 1]} : vector<32x128xf32> to vector<8x128xf32>
    %11 = vector.extract_strided_slice %8 {offsets = [16, 0], sizes = [16, 128], strides = [1, 1]} : vector<32x128xf32> to vector<16x128xf32>
    %12 = arith.mulf %9, %9 : vector<8x128xf32>
    %cst_6 = arith.constant dense<0.000000e+00> : vector<128xf32>
    %13 = vector.multi_reduction <add>, %12, %cst_6 [0] : vector<8x128xf32> to vector<128xf32>
    %14 = vector.shape_cast %13 : vector<128xf32> to vector<1x128xf32>
    %15 = math.rsqrt %14 : vector<1x128xf32>
    %16 = vector.broadcast %15 : vector<1x128xf32> to vector<8x128xf32>
    %17 = arith.mulf %9, %16 : vector<8x128xf32>
    %18 = arith.mulf %10, %10 : vector<8x128xf32>
    %cst_7 = arith.constant dense<0.000000e+00> : vector<128xf32>
    %19 = vector.multi_reduction <add>, %18, %cst_7 [0] : vector<8x128xf32> to vector<128xf32>
    %20 = vector.shape_cast %19 : vector<128xf32> to vector<1x128xf32>
    %21 = math.rsqrt %20 : vector<1x128xf32>
    %22 = vector.broadcast %21 : vector<1x128xf32> to vector<8x128xf32>
    %23 = arith.mulf %10, %22 : vector<8x128xf32>
    %cst_8 = arith.constant dense<0.000000e+00> : vector<8xf32>
    %24 = vector.multi_reduction <add>, %23, %cst_8 [1] : vector<8x128xf32> to vector<8xf32>
    %25 = vector.shape_cast %24 : vector<8xf32> to vector<8x1xf32>
    %cst_9 = arith.constant 9.99999997E-7 : f32
    %26 = vector.broadcast %cst_9 : f32 to vector<8x1xf32>
    %27 = arith.addf %25, %26 : vector<8x1xf32>
    %28 = vector.broadcast %27 : vector<8x1xf32> to vector<8x128xf32>
    %29 = arith.mulf %17, %28 : vector<8x128xf32>
    %cst_10 = arith.constant dense<0.000000e+00> : vector<128xf32>
    %30 = vector.multi_reduction <add>, %29, %cst_10 [0] : vector<8x128xf32> to vector<128xf32>
    %31 = vector.shape_cast %30 : vector<128xf32> to vector<1x128xf32>
    %cst_11 = arith.constant 1.280000e+02 : f32
    %32 = vector.broadcast %cst_11 : f32 to vector<1x128xf32>
    %33 = arith.addf %32, %31 : vector<1x128xf32>
    %34 = tpu.reciprocal %33 {approx = true} : vector<1x128xf32> -> vector<1x128xf32>
    %cst_12 = arith.constant dense<0.000000e+00> : vector<16xf32>
    %35 = vector.multi_reduction <add>, %11, %cst_12 [1] : vector<16x128xf32> to vector<16xf32>
    %36 = vector.shape_cast %35 : vector<16xf32> to vector<16x1xf32>
    %cst_13 = arith.constant dense<0.000000e+00> : vector<8x16xf32>
    %37 = tpu.matmul %23, %11, %cst_13 {dimension_numbers = #tpu.dot_dimension_numbers<[1], [1], [0], [0], [0, 0, 1, 0], [], []>} : vector<8x128xf32>, vector<16x128xf32>, vector<8x16xf32> -> vector<8x16xf32>
    %cst_14 = arith.constant dense<0.000000e+00> : vector<16x128xf32>
    %38 = tpu.matmul %37, %17, %cst_14 {dimension_numbers = #tpu.dot_dimension_numbers<[0], [0], [1], [1], [0, 1, 1, 1], [], []>} : vector<8x16xf32>, vector<8x128xf32>, vector<16x128xf32> -> vector<16x128xf32>
    %39 = vector.broadcast %36 : vector<16x1xf32> to vector<16x128xf32>
    %40 = arith.addf %39, %38 : vector<16x128xf32>
    %41 = vector.broadcast %34 : vector<1x128xf32> to vector<16x128xf32>
    %42 = arith.mulf %40, %41 : vector<16x128xf32>
    %43 = vector.broadcast %0 : f32 to vector<16x128xf32>
    %44 = arith.mulf %43, %42 : vector<16x128xf32>
    %45 = arith.addf %3, %44 : vector<16x128xf32>
    %46 = arith.index_cast %c0_i32 : i32 to index
    %c0_15 = arith.constant 0 : index
    %c0_16 = arith.constant 0 : index
    %47 = vector.load %arg5[%46, %c0_15, %c0_16] : memref<2x16x128xf32, #tpu.memory_space<vmem>>, vector<1x16x128xf32>
    %48 = vector.shape_cast %47 : vector<1x16x128xf32> to vector<16x128xf32>
    %49 = vector.shape_cast %45 : vector<16x128xf32> to vector<1x16x128xf32>
    tpu.vector_store %arg5[%46, %c0_15, %c0_16], %49 {strides = array<i32>} : memref<2x16x128xf32, #tpu.memory_space<vmem>>, vector<1x16x128xf32>,
    %c1_i32 = arith.constant 1 : i32
    %50 = arith.index_cast %c1_i32 : i32 to index
    %c0_17 = arith.constant 0 : index
    %c0_18 = arith.constant 0 : index
    %51 = vector.load %arg1[%50, %c0_17, %c0_18] : memref<2x16x128xf32, #tpu.memory_space<vmem>>, vector<1x16x128xf32>
    %52 = vector.shape_cast %51 : vector<1x16x128xf32> to vector<16x128xf32>
    %c0_19 = arith.constant 0 : index
    %c0_20 = arith.constant 0 : index
    %53 = vector.load %arg2[%c0_19, %c0_20] : memref<32x16xf32, #tpu.memory_space<vmem>>, vector<32x16xf32>
    %cst_21 = arith.constant dense<0.000000e+00> : vector<32x128xf32>
    %54 = tpu.matmul %53, %52, %cst_21 {dimension_numbers = #tpu.dot_dimension_numbers<[1], [0], [0], [1], [0, 0, 1, 1], [], []>} : vector<32x16xf32>, vector<16x128xf32>, vector<32x128xf32> -> vector<32x128xf32>
    %c0_22 = arith.constant 0 : index
    %c0_23 = arith.constant 0 : index
    %55 = vector.load %arg3[%c0_22, %c0_23] : memref<32x1xf32, #tpu.memory_space<vmem>>, vector<32x1xf32>
    %56 = vector.broadcast %55 : vector<32x1xf32> to vector<32x128xf32>
    %57 = arith.addf %54, %56 : vector<32x128xf32>
    %58 = vector.extract_strided_slice %57 {offsets = [0, 0], sizes = [8, 128], strides = [1, 1]} : vector<32x128xf32> to vector<8x128xf32>
    %59 = vector.extract_strided_slice %57 {offsets = [8, 0], sizes = [8, 128], strides = [1, 1]} : vector<32x128xf32> to vector<8x128xf32>
    %60 = vector.extract_strided_slice %57 {offsets = [16, 0], sizes = [16, 128], strides = [1, 1]} : vector<32x128xf32> to vector<16x128xf32>
    %61 = arith.mulf %58, %58 : vector<8x128xf32>
    %cst_24 = arith.constant dense<0.000000e+00> : vector<128xf32>
    %62 = vector.multi_reduction <add>, %61, %cst_24 [0] : vector<8x128xf32> to vector<128xf32>
    %63 = vector.shape_cast %62 : vector<128xf32> to vector<1x128xf32>
    %64 = math.rsqrt %63 : vector<1x128xf32>
    %65 = vector.broadcast %64 : vector<1x128xf32> to vector<8x128xf32>
    %66 = arith.mulf %58, %65 : vector<8x128xf32>
    %67 = arith.mulf %59, %59 : vector<8x128xf32>
    %cst_25 = arith.constant dense<0.000000e+00> : vector<128xf32>
    %68 = vector.multi_reduction <add>, %67, %cst_25 [0] : vector<8x128xf32> to vector<128xf32>
    %69 = vector.shape_cast %68 : vector<128xf32> to vector<1x128xf32>
    %70 = math.rsqrt %69 : vector<1x128xf32>
    %71 = vector.broadcast %70 : vector<1x128xf32> to vector<8x128xf32>
    %72 = arith.mulf %59, %71 : vector<8x128xf32>
    %cst_26 = arith.constant dense<0.000000e+00> : vector<8xf32>
    %73 = vector.multi_reduction <add>, %72, %cst_26 [1] : vector<8x128xf32> to vector<8xf32>
    %74 = vector.shape_cast %73 : vector<8xf32> to vector<8x1xf32>
    %cst_27 = arith.constant 9.99999997E-7 : f32
    %75 = vector.broadcast %cst_27 : f32 to vector<8x1xf32>
    %76 = arith.addf %74, %75 : vector<8x1xf32>
    %77 = vector.broadcast %76 : vector<8x1xf32> to vector<8x128xf32>
    %78 = arith.mulf %66, %77 : vector<8x128xf32>
    %cst_28 = arith.constant dense<0.000000e+00> : vector<128xf32>
    %79 = vector.multi_reduction <add>, %78, %cst_28 [0] : vector<8x128xf32> to vector<128xf32>
    %80 = vector.shape_cast %79 : vector<128xf32> to vector<1x128xf32>
    %cst_29 = arith.constant 1.280000e+02 : f32
    %81 = vector.broadcast %cst_29 : f32 to vector<1x128xf32>
    %82 = arith.addf %81, %80 : vector<1x128xf32>
    %83 = tpu.reciprocal %82 {approx = true} : vector<1x128xf32> -> vector<1x128xf32>
    %cst_30 = arith.constant dense<0.000000e+00> : vector<16xf32>
    %84 = vector.multi_reduction <add>, %60, %cst_30 [1] : vector<16x128xf32> to vector<16xf32>
    %85 = vector.shape_cast %84 : vector<16xf32> to vector<16x1xf32>
    %cst_31 = arith.constant dense<0.000000e+00> : vector<8x16xf32>
    %86 = tpu.matmul %72, %60, %cst_31 {dimension_numbers = #tpu.dot_dimension_numbers<[1], [1], [0], [0], [0, 0, 1, 0], [], []>} : vector<8x128xf32>, vector<16x128xf32>, vector<8x16xf32> -> vector<8x16xf32>
    %cst_32 = arith.constant dense<0.000000e+00> : vector<16x128xf32>
    %87 = tpu.matmul %86, %66, %cst_32 {dimension_numbers = #tpu.dot_dimension_numbers<[0], [0], [1], [1], [0, 1, 1, 1], [], []>} : vector<8x16xf32>, vector<8x128xf32>, vector<16x128xf32> -> vector<16x128xf32>
    %88 = vector.broadcast %85 : vector<16x1xf32> to vector<16x128xf32>
    %89 = arith.addf %88, %87 : vector<16x128xf32>
    %90 = vector.broadcast %83 : vector<1x128xf32> to vector<16x128xf32>
    %91 = arith.mulf %89, %90 : vector<16x128xf32>
    %92 = vector.broadcast %0 : f32 to vector<16x128xf32>
    %93 = arith.mulf %92, %91 : vector<16x128xf32>
    %94 = arith.addf %52, %93 : vector<16x128xf32>
    %95 = arith.index_cast %c1_i32 : i32 to index
    %c0_33 = arith.constant 0 : index
    %c0_34 = arith.constant 0 : index
    %96 = vector.load %arg5[%95, %c0_33, %c0_34] : memref<2x16x128xf32, #tpu.memory_space<vmem>>, vector<1x16x128xf32>
    %97 = vector.shape_cast %96 : vector<1x16x128xf32> to vector<16x128xf32>
    %98 = vector.shape_cast %94 : vector<16x128xf32> to vector<1x16x128xf32>
    tpu.vector_store %arg5[%95, %c0_33, %c0_34], %98 {strides = array<i32>} : memref<2x16x128xf32, #tpu.memory_space<vmem>>, vector<1x16x128xf32>,
    %c2_i32 = arith.constant 2 : i32
    return
  }
  func.func @transform_0(%arg0: i32) -> (i32, i32, i32) {
    %c0_i32 = arith.constant 0 : i32
    %c0_i32_0 = arith.constant 0 : i32
    %c0_i32_1 = arith.constant 0 : i32
    return %arg0, %c0_i32, %c0_i32_0 : i32, i32, i32
  }
  func.func @transform_1(%arg0: i32) -> (i32, i32) {
    %c0_i32 = arith.constant 0 : i32
    %c0_i32_0 = arith.constant 0 : i32
    %c0_i32_1 = arith.constant 0 : i32
    return %c0_i32, %c0_i32_0 : i32, i32
  }
  func.func @transform_2(%arg0: i32) -> (i32, i32) {
    %c0_i32 = arith.constant 0 : i32
    %c0_i32_0 = arith.constant 0 : i32
    %c0_i32_1 = arith.constant 0 : i32
    return %c0_i32, %c0_i32_0 : i32, i32
  }
  func.func @transform_3(%arg0: i32) -> i32 {
    %c0_i32 = arith.constant 0 : i32
    %c0_i32_0 = arith.constant 0 : i32
    return %c0_i32 : i32
  }
  func.func @transform_4(%arg0: i32) -> (i32, i32, i32) {
    %c0_i32 = arith.constant 0 : i32
    %c0_i32_0 = arith.constant 0 : i32
    %c0_i32_1 = arith.constant 0 : i32
    return %arg0, %c0_i32, %c0_i32_0 : i32, i32, i32
  }
}

</mosaic_0001>

<bundles_post_ra>
// kernel: tpu_custom_call.1
= control target key start
LH: loop header
LB: loop body
LE: loop exit
PB: predicated region body
PF: predicated region fallthrough
CT: control target
= control target key end

     0   :  { %vm50_vm0 = vcmask 130048   ;;  %v890_v4 = vmov 0   ;;  %s1030_s0 = inlined_call_operand.vmem [shape: f32[2,16,128], index: 0, kind: input, shape index: {}]   ;;  %s1031_s1 = inlined_call_operand.vmem [shape: f32[32,16], index: 1, kind: input, shape index: {}]   ;;  %s1032_s2 = inlined_call_operand.vmem [shape: f32[32,1], index: 2, kind: input, shape index: {}]   ;;  %s1033_s3 = inlined_call_operand.<no memory space> [shape: f32[1], index: 3, kind: input, shape index: {}]   ;;  %s1034_s4 = inlined_call_operand.hbm [shape: f32[2,16,128], index: 4, kind: output, shape index: {}]  }
   0x1   :  { %v925_v0 = vld [vmem:[%s1030_s0] sm:$0xff]  ;;  %v930_v1 = vld [vmem:[%s1030_s0 + $0x8] sm:$0xff]  ;;  %852 = vset.pattern.permute.xlu0 %v890_v4  ;;  %853 = vset.pattern.permute.xlu1 %v890_v4  ;;  %v387_v6 = vld [vmem:[%s1032_s2 + $0x18] sm:$0xff] }
   0x2   :  { %v935_v2 = vld [vmem:[%s1031_s1] sm:$0xff]  ;;  %v831_v3 = vpack.c.bf16 %v930_v1, %v925_v0  ;;  %v27_v5 = vld [vmem:[%s1032_s2 + $0x8] sm:$0xff] }
   0x3   :  { %791 = vmatprep.mubr.msk.f32.mxu0 %vm50_vm0, %v935_v2  ;;  %37 = vperm.xlu0 %852, %v27_v5  }
   0x4   :  { %832 = vmatprep.subr.bf16.mxu0 %v831_v3 }
   0x5   :  { %10 = vsyncpa [#allocation4], 0  ;;  %834 = vmatpush3.bf16.msra.mxu0 %v831_v3  ;;  %v950_v7 = vld [vmem:[%s1031_s1 + $0x8] sm:$0xff]  ;;  %v28_v8 = vld [vmem:[%s1032_s2 + $0x10] sm:$0xff]  ;;  %47 = vperm.xlu1 %853, %v387_v6   ;;  %v891_v12 = vmov 0.0|0.0   ;;  %vm892_vm1 = vmmov 0  }
   0x6   :  { %v24_v9 = vld [vmem:[%s1031_s1 + $0x10] sm:$0xff]  ;;  %v384_v10 = vld [vmem:[%s1032_s2] sm:$0xff]  ;;  %v25_v11 = vld [vmem:[%s1031_s1 + $0x18] sm:$0xff]  ;;  %835 = vmatprep.subr.bf16.mxu1 %v891_v12  ;;  %v893_v13 = vmov 0.0   ;;  %vm284_vm2 = vcmask 64512  }
   0x7   :  { %42 = vperm.xlu0 %852, %v28_v8   ;;  %801 = vmatprep.mubr.msk.f32.mxu1 %vm892_vm1, %v893_v13  ;;  %v973_v24 = vld [vmem:[%s1030_s0 + $0x10] sm:$0xff]  ;;  %v978_v25 = vld [vmem:[%s1030_s0 + $0x18] sm:$0xff] }
   0x8   :  { %792 = vmatmul.mubr.msk.f32.vlgmr.msra.gmra.mrb[0].mxu0 %vm50_vm0, %v950_v7  ;;  %v838_v33 = vpack.c.bf16 %v978_v25, %v973_v24 }
   0x9   :  { %794 = vmatprep.mubr.msk.f32.mxu0 %vm50_vm0, %v24_v9  ;;  %32 = vperm.xlu1 %853, %v384_v10  }
   0xb   :  { %395 = vperm.xlu0 %852, %v27_v5  }
   0xc   :  { %795 = vmatmul.mubr.msk.f32.gmra.mrb[2].mxu0 %vm50_vm0, %v25_v11 }
   0xd   :  { %400 = vperm.xlu1 %853, %v28_v8  }
   0xf   :  { %405 = vperm.xlu0 %852, %v387_v6  }
  0x13   :  { %390 = vperm.xlu0 %852, %v384_v10  }
  0x82   :  { %v38_v15 = vpop.permute.xlu0 %37 }
  0x84   :  { %v48_v14 = vpop.permute.xlu1 %47 }
  0x86   :  { %v43_v26 = vpop.permute.xlu0 %42 }
  0x88   :  { %v33_v16 = vpop.permute.xlu1 %32 }
  0x8a   :  { %v396_v48 = vpop.permute.xlu0 %395 }
  0x8e   :  { %v406_v49 = vpop.permute.xlu0 %405 }
  0x92   :  { %v391_v53 = vpop.permute.xlu0 %390 }
  0xdb   :  { %v793_v17 = vpop.f32.mrb[0].mxu0 }
  0xdc   :  { %v135_v18 = vadd.f32 %v793_v17, %v38_v15  ;;  %v129_v19 = vpop.f32.mrb[1].mxu0 }
  0xdd   :  { %v130_v20 = vadd.f32 %v129_v19, %v33_v16  ;;  %v401_v16 = vpop.permute.xlu1 %400 }
  0xde   :  { %v157_v21 = vmul.f32 %v135_v18, %v135_v18 }
  0xdf   :  { %v148_v22 = vmul.f32 %v130_v20, %v130_v20  ;;  %v796_v23 = vpop.f32.mrb[2].mxu0 }
  0xe0   :  { %v158_v27 = vrot.slane %v157_v21, 4  ;;  %v980_v28 = vadd.f32 %v796_v23, %v48_v14  ;;  %v139_v29 = vpop.f32.mrb[3].mxu0 }
  0xe1   :  { %v149_v30 = vrot.slane %v148_v22, 4  ;;  %v982_v31 = vadd.f32 %v139_v29, %v43_v26 }
  0xe2   :  { %v159_v32 = vadd.f32 %v158_v27, %v157_v21 }
  0xe3   :  { %v150_v34 = vadd.f32 %v149_v30, %v148_v22  ;;  %v836_v35 = vpack.c.bf16 %v980_v28, %v982_v31 }
  0xe4   :  { %v160_v36 = vrot.slane %v159_v32, 2 }
  0xe5   :  { %v151_v37 = vrot.slane %v150_v34, 2  ;;  %837 = vmatpush3.bf16.xpose.msra.mxu1 %v836_v35 }
  0xe6   :  { %v161_v38 = vadd.f32 %v160_v36, %v159_v32  ;;  %839 = vmatprep.subr.bf16.mxu1 %v838_v33 }
  0xe7   :  { %v152_v39 = vadd.f32 %v151_v37, %v150_v34 }
  0xe8   :  { %v162_v40 = vrot.slane %v161_v38, 1 }
  0xe9   :  { %v153_v41 = vrot.slane %v152_v39, 1 }
  0xea   :  { %v163_v42 = vadd.f32 %v162_v40, %v161_v38 }
  0xeb   :  { %v154_v43 = vadd.f32 %v153_v41, %v152_v39 }
  0xec   :  { %854 = vrsqrt.f32 %v163_v42 }
  0xed   :  { %856 = vrsqrt.f32 %v154_v43 }
  0xf6   :  { %v855_v44 = vpop.eup %854 }
  0xf7   :  { %v857_v45 = vpop.eup %856  ;;  %v988_v46 = vmul.f32 %v855_v44, %v135_v18 }
  0xf8   :  { %v990_v47 = vmul.f32 %v857_v45, %v130_v20  ;;  %v370_v45 = vstv %s1033_s3  ;;  %s894_s3 = smov [#allocation3]  }
  0xf9   :  { %802 = vmatmul.mubr.f32.vlgmr.msra.gmra.mrb[0].mxu1 %v988_v46  ;;  %s738_s12 = sshll.u32 %s894_s3, 4  ;;  %s739_s12 = int_to_ptr.vmem [resolvable:$true] %s738_s12 }
  0xfa   :  { %804 = vmatprep.subr.mxu0 %v990_v47  ;;  %841 = vmatpush3.bf16.msra.mxu1 %v838_v33  ;;  %s866_s13 = scalar_lea.vmem %s739_s12, 512  ;;  %p871_p1 = scmp.lt.s32.totalorder %s739_s12, %s739_s12 }
  0xfb   :  { %805 = vmatpush3.msra.mxu0 %v990_v47  ;;  %813 = vmatprep.mubr.msk.f32.mxu1 %vm50_vm0, %v935_v2  ;;  %p867_p0 = scmp.ne.s32.totalorder %s739_s12, %s866_s13  ;;  %p872_p2 = scmp.lt.s32.totalorder %s866_s13, %s866_s13 }
  0xfc   :  { %842 = vmatprep.subr.bf16.mxu0 %v891_v12 }
  0xfd   :  { %814 = vmatmul.mubr.msk.f32.vlgmr.msra.gmra.mrb[2].mxu1 %vm50_vm0, %v950_v7  ;;  %p873_p3 = por %p872_p2, %p871_p1 }
  0xfe   :  { %816 = vmatprep.mubr.msk.f32.mxu1 %vm50_vm0, %v24_v9 }
  0xff   :  { %p874_p4 = pnand %p873_p3, %p867_p0 }
 0x101   :  { %817 = vmatmul.mubr.msk.f32.gmra.mrb[4].mxu1 %vm50_vm0, %v25_v11 }
 0x1cc   :  { %v248_v50 = vpop.f32.mrb[0].mxu1 }
 0x1cd   :  { %252 = vxpose.xlu1.b32.start.end [1/1] (short) (narrow) %v248_v50, 16  ;;  %v803_v51 = vpop.f32.mrb[1].mxu1 }
 0x1d0   :  { %v815_v52 = vpop.f32.mrb[2].mxu1 }
 0x1d1   :  { %v492_v54 = vadd.f32 %v815_v52, %v396_v48  ;;  %v486_v55 = vpop.f32.mrb[3].mxu1 }
 0x1d2   :  { %v487_v56 = vadd.f32 %v486_v55, %v391_v53 }
 0x1d3   :  { %v514_v57 = vmul.f32 %v492_v54, %v492_v54 }
 0x1d4   :  { %v505_v58 = vmul.f32 %v487_v56, %v487_v56  ;;  %v818_v59 = vpop.f32.mrb[4].mxu1 }
 0x1d5   :  { %v515_v60 = vrot.slane %v514_v57, 4  ;;  %v496_v61 = vpop.f32.mrb[5].mxu1  ;;  %v502_v18 = vadd.f32 %v818_v59, %v406_v49 }
 0x1d6   :  { %v506_v62 = vrot.slane %v505_v58, 4  ;;  %v497_v17 = vadd.f32 %v496_v61, %v401_v16 }
 0x1d7   :  { %v516_v63 = vadd.f32 %v515_v60, %v514_v57 }
 0x1d8   :  { %v507_v2 = vadd.f32 %v506_v62, %v505_v58  ;;  %v843_v20 = vpack.c.bf16 %v502_v18, %v497_v17 }
 0x1d9   :  { %v517_v3 = vrot.slane %v516_v63, 2 }
 0x1da   :  { %v508_v4 = vrot.slane %v507_v2, 2 }
 0x1db   :  { %v518_v6 = vadd.f32 %v517_v3, %v516_v63 }
 0x1dc   :  { %v509_v5 = vadd.f32 %v508_v4, %v507_v2 }
 0x1dd   :  { %v519_v9 = vrot.slane %v518_v6, 1 }
 0x1de   :  { %v510_v7 = vrot.slane %v509_v5, 1 }
 0x1df   :  { %v520_v10 = vadd.f32 %v519_v9, %v518_v6 }
 0x1e0   :  { %v511_v8 = vadd.f32 %v510_v7, %v509_v5 }
 0x1e2   :  { %858 = vrsqrt.f32 %v511_v8 }
 0x1e3   :  { %860 = vrsqrt.f32 %v520_v10 }
 0x1ec   :  { %v859_v11 = vpop.eup %858 }
 0x1ed   :  { %v513_v12 = vmul.f32 %v859_v11, %v487_v56  ;;  %v861_v14 = vpop.eup %860 }
 0x1ee   :  { %v522_v15 = vmul.f32 %v861_v14, %v492_v54 }
 0x1ef   :  { %826 = vmatprep.subr.mxu1 %v513_v12 }
 0x1f0   :  { %827 = vmatpush3.msra.mxu1 %v513_v12 }
 0x1f8   :  { %523 = vadd.xlane.f32.xlu1 %v522_v15 }
 0x1fc   :  { %178 = vadd.xlane.f32.xlu1 %v982_v31 }
 0x200   :  { %535 = vadd.xlane.f32.xlu1 %v497_v17 }
 0x24d   :  { %v268_v19 = vpop.trf.xlu1 }
 0x24e   :  { %806 = vmatprep.mubr.msk.f32.mxu0 %vm284_vm2, %v268_v19 }
 0x251   :  { %v269_v21 = vpop.trf.xlu1 }
 0x252   :  { %807 = vmatmul.mubr.msk.f32.vlgmr.msra.gmra.mrb[4].mxu0 %vm284_vm2, %v269_v21 }
 0x253   :  { %844 = vmatpush3.bf16.xpose.msra.mxu0 %v843_v20  ;;  %823 = vmatprep.mubr.msk.f32.mxu0 %vm892_vm1, %v893_v13 }
 0x25a   :  { %824 = vmatmul.mubr.f32.vlgmr.msra.gmra.mrb[6].mxu0 %v522_v15 }
 0x325   :  { %v808_v22 = vpop.f32.mrb[4].mxu0 }
 0x326   :  { %v357_v23 = vpop.f32.mrb[5].mxu0 }
 0x32d   :  { %v605_v26 = vpop.f32.mrb[6].mxu0 }
 0x32e   :  { %609 = vxpose.xlu0.b32.start.end [1/1] (short) (narrow) %v605_v26, 16  ;;  %v825_v27 = vpop.f32.mrb[7].mxu0 }
 0x35f   :  { %166 = vadd.xlane.f32.xlu0 %v988_v46 }
 0x363   :  { %180 = vadd.xlane.f32.xlu0 %v980_v28  ;;  %v524_v28 = vpop.xlane.xlu1 %523 }
 0x364   :  { %v525_v52 = vadd.f32 1e-06, %v524_v28 }
 0x366   :  { %v526_v53 = vmul.f32 %v525_v52, %v513_v12 }
 0x367   :  { %537 = vadd.xlane.f32.xlu0 %v502_v18  ;;  %v179_v41 = vpop.xlane.xlu1 %178 }
 0x368   :  { %v366_v42 = vadd.f32 %v357_v23, %v179_v41  ;;  %v527_v54 = vrot.slane %v526_v53, 4 }
 0x36a   :  { %v528_v55 = vadd.f32 %v527_v54, %v526_v53 }
 0x36b   :  { %v536_v63 = vpop.xlane.xlu1 %535 }
 0x36c   :  { %v529_v56 = vrot.slane %v528_v55, 2 }
 0x36e   :  { %v530_v57 = vadd.f32 %v529_v56, %v528_v55 }
 0x370   :  { %v531_v58 = vrot.slane %v530_v57, 1 }
 0x372   :  { %v532_v59 = vadd.f32 %v531_v58, %v530_v57 }
 0x374   :  { %v533_v60 = vadd.f32 128.0, %v532_v59 }
 0x3ae   :  { %v625_v29 = vpop.trf.xlu0 }
 0x3af   :  { %828 = vmatprep.mubr.msk.f32.mxu1 %vm284_vm2, %v625_v29 }
 0x3b2   :  { %v626_v30 = vpop.trf.xlu0 }
 0x3b3   :  { %829 = vmatmul.mubr.msk.f32.vlgmr.msra.gmra.mrb[6].mxu1 %vm284_vm2, %v626_v30 }
 0x3ec   :  { %v167_v31 = vpop.xlane.xlu0 %166 }
 0x3ed   :  { %v168_v32 = vadd.f32 1e-06, %v167_v31 }
 0x3ef   :  { %v169_v13 = vmul.f32 %v168_v32, %v990_v47 }
 0x3f0   :  { %v181_v40 = vpop.xlane.xlu0 %180 }
 0x3f1   :  { %v170_v33 = vrot.slane %v169_v13, 4  ;;  %v367_v43 = vadd.f32 %v808_v22, %v181_v40 }
 0x3f3   :  { %v171_v34 = vadd.f32 %v170_v33, %v169_v13 }
 0x3f4   :  { %v538_v61 = vpop.xlane.xlu0 %537 }
 0x3f5   :  { %v172_v35 = vrot.slane %v171_v34, 2 }
 0x3f7   :  { %v173_v36 = vadd.f32 %v172_v35, %v171_v34 }
 0x3f9   :  { %v174_v37 = vrot.slane %v173_v36, 1 }
 0x3fb   :  { %v175_v38 = vadd.f32 %v174_v37, %v173_v36 }
 0x3fd   :  { %v176_v39 = vadd.f32 128.0, %v175_v38 }
 0x3ff   :  { %862 = vrcp.f32 %v176_v39 }
 0x400   :  { %864 = vrcp.f32 %v533_v60 }
 0x409   :  { %v863_v44 = vpop.eup %862 }
 0x40a   :  { %v368_v46 = vmul.f32 %v863_v44, %v366_v42  ;;  %v369_v47 = vmul.f32 %v863_v44, %v367_v43 }
 0x40c   :  { %v371_v48 = vmul.f32 %v370_v45, %v368_v46  ;;  %v372_v49 = vmul.f32 %v370_v45, %v369_v47 }
 0x40e   :  { %v373_v50 = vadd.f32 %v371_v48, %v925_v0  ;;  %v374_v51 = vadd.f32 %v372_v49, %v930_v1  ;;  %v865_v0 = vpop.eup %864 }
 0x410   :  { %375 = vst [vmem:[#allocation3] sm:$0xff] %v373_v50  ;;  %376 = vst [vmem:[#allocation3 + $0x8] sm:$0xff] %v374_v51 }
 0x486   :  { %v830_v62 = vpop.f32.mrb[6].mxu1 }
 0x487   :  { %v723_v2 = vadd.f32 %v830_v62, %v538_v61  ;;  %v713_v3 = vpop.f32.mrb[7].mxu1 }
 0x488   :  { %v722_v4 = vadd.f32 %v713_v3, %v536_v63 }
 0x489   :  { %v725_v1 = vmul.f32 %v865_v0, %v723_v2 }
 0x48a   :  { %v724_v5 = vmul.f32 %v865_v0, %v722_v4 }
 0x48b   :  { %v727_v6 = vmul.f32 %v725_v1, %v370_v45 }
 0x48c   :  { %v726_v7 = vmul.f32 %v724_v5, %v370_v45 }
 0x48d   :  { %v729_v8 = vadd.f32 %v978_v25, %v727_v6 }
 0x48e   :  { %v728_v9 = vadd.f32 %v973_v24, %v726_v7 }
 0x48f   :  { %732 = vst [vmem:[#allocation3 + $0x18] sm:$0xff] %v729_v8 }
 0x490   :  { %731 = vst [vmem:[#allocation3 + $0x10] sm:$0xff] %v728_v9 }
 0x491   :  { %877 = shalt.err (!%p874_p4)
}
 0x492   :  { %s878_s16 = scalar_lea.hbm %s1034_s4, 512 }
 0x493   :  { %p879_p5 = scmp.ne.s32.totalorder %s1034_s4, %s878_s16  ;;  %p882_p6 = scmp.lt.u32.totalorder %s878_s16, %s1034_s4 }
 0x495   :  { %p884_p7 = pnand %p882_p6, %p879_p5 }
 0x497   :  { %887 = shalt.err (!%p884_p7)
}
 0x498   :  { %s895_s21 = smov 128   ;;  %s896_s22 = smov 8  }
 0x499   :  { %744 = dma.vmem_to_hbm [thread:$0]  %s739_s12, 512, %s1034_s4, [#allocation4], %s895_s21, %s895_s21, %s896_s22  }
 0x49a   :  { %888 = dma.done.wait [#allocation4], 512  }
 0x49b   :  { %889 = vsyncadd [#allocation4], 4294966784 }
 0x49c   :  { %748 = vsyncpa [#allocation4], 1 }

</bundles_post_ra>
